<compile_context>
chip_gen: v7x
topology: tpu7x:2x2x1
jax: 0.10.0
libtpu: 0.0.40
codegen_flags: <defaults>
</compile_context>

<pallas_src>
import jax
import jax.numpy as jnp
from jax.experimental import pallas as pl
from jax.experimental.pallas import tpu as pltpu


def _round_up(x, m):
    return ((x + m - 1) // m) * m


def _choose_tile_b(B, obs_dim, h1_dim, h2_dim, in_itemsize):
    """Pick a batch tile from a lane-padded VMEM budget (all sizes in f32 rows)."""
    lane = 128
    # Per-batch-row VMEM bytes: 2 double-buffered obs tiles (input dtype) plus
    # h1/h2 activations and headroom for compiler temporaries (f32).
    row_bytes = (2 * in_itemsize * _round_up(obs_dim, lane)
                 + 2 * 4 * (_round_up(h1_dim, lane) + _round_up(h2_dim, lane)))
    tile = (8 * 1024 * 1024) // max(row_bytes, 1)   # ~8 MiB activation budget
    tile = min(tile, 4096)                          # headroom under v7x's 64 MiB VMEM
    if B >= 16:
        # At least 2 grid steps so the "parallel" batch axis can split across
        # the two TensorCores on v7x (no-op on single-TC v5e/v6e).
        tile = min(tile, _round_up(pl.cdiv(B, 2), 8))
    tile = min(tile, _round_up(B, 8))
    if tile >= lane:
        tile = (tile // lane) * lane                # lane-aligned output rows
    else:
        tile = (tile // 8) * 8
    return max(tile, 8)


def _mlp_critic_kernel(x_ref, w1_ref, b1_ref, w2_ref, b2_ref, w3_ref, b3_ref,
                       o_ref):
    x = x_ref[...]

    # Layer 1: Linear + tanh (MXU matmul, f32 accumulation; bias/tanh in f32).
    w1 = w1_ref[...]
    h1 = jnp.dot(x.astype(w1.dtype), w1, preferred_element_type=jnp.float32)
    h1 = jnp.tanh(h1 + b1_ref[...])

    # Layer 2: Linear + tanh.
    w2 = w2_ref[...]
    h2 = jnp.dot(h1.astype(w2.dtype), w2, preferred_element_type=jnp.float32)
    h2 = jnp.tanh(h2 + b2_ref[...])

    # Output layer (out_features == 1): contract over the hidden dim with the
    # batch landing on the LANE axis -> (1, tile_b) lane-dense result, so the
    # store is full-width (no masked lane-width-1 stores).
    w3 = w3_ref[...].astype(jnp.float32)                       # (1, H2)
    v = jax.lax.dot_general(w3, h2,
                            dimension_numbers=(((1,), (1,)), ((), ())),
                            preferred_element_type=jnp.float32)  # (1, tile_b)
    v = v + b3_ref[0, 0]

    o_ref[...] = v.reshape(o_ref.shape).astype(o_ref.dtype)


def mlp_critic_forward(obs, params, *, tile_b=None, use_bf16=False):
    """obs: (B, obs_dim). Returns (B,) values == torch.squeeze(v_net(obs), -1)."""
    B, obs_dim = obs.shape
    w1, b1 = params["w1"], params["b1"]
    w2, b2 = params["w2"], params["b2"]
    w3, b3 = params["w3"], params["b3"]
    h1_dim, h2_dim = w1.shape[1], w2.shape[1]

    if use_bf16:
        # Only the tiny, VMEM-resident weights are cast; obs stays in its HBM
        # dtype (no extra read+write pass) and is cast in-kernel for the MXU.
        w1 = w1.astype(jnp.bfloat16)
        w2 = w2.astype(jnp.bfloat16)
        w3 = w3.astype(jnp.bfloat16)

    w3_row = w3.reshape(1, h2_dim)                   # (1, H2) row
    b3_s = b3.reshape(1, 1).astype(jnp.float32)      # SMEM scalar

    if tile_b is None:
        tile_b = _choose_tile_b(B, obs_dim, h1_dim, h2_dim, obs.dtype.itemsize)
    else:
        tile_b = max(8, (int(tile_b) // 8) * 8)
        tile_b = min(tile_b, _round_up(B, 8))
    num_tiles = pl.cdiv(B, tile_b)

    cost = pl.CostEstimate(
        flops=2 * B * (obs_dim * h1_dim + h1_dim * h2_dim + h2_dim),
        transcendentals=B * (h1_dim + h2_dim),
        bytes_accessed=(obs.dtype.itemsize * B * obs_dim + 4 * B
                        + w1.dtype.itemsize * (obs_dim * h1_dim + h1_dim * h2_dim + h2_dim)
                        + 4 * (h1_dim + h2_dim + 1)),
    )

    # No jnp.pad: when B % tile_b != 0 the last obs block reads past the array
    # edge (unspecified tail rows).  Rows are independent, so the garbage tail
    # only produces garbage output rows that are sliced off below.
    out = pl.pallas_call(
        _mlp_critic_kernel,
        out_shape=jax.ShapeDtypeStruct((num_tiles, 1, tile_b), jnp.float32),
        grid=(num_tiles,),
        in_specs=[
            # obs streamed per batch tile (pipelined, double-buffered).
            pl.BlockSpec((tile_b, obs_dim), lambda i: (i, 0)),
            # Weights / biases: constant block index -> fetched once, stay resident.
            pl.BlockSpec(w1.shape, lambda i: (0, 0)),
            pl.BlockSpec(b1.shape, lambda i: (0, 0)),
            pl.BlockSpec(w2.shape, lambda i: (0, 0)),
            pl.BlockSpec(b2.shape, lambda i: (0, 0)),
            pl.BlockSpec(w3_row.shape, lambda i: (0, 0)),
            # Final bias as an SMEM scalar.
            pl.BlockSpec(memory_space=pltpu.MemorySpace.SMEM),
        ],
        # Lane-dense output: one (1, 1, tile_b) row per grid step.
        out_specs=pl.BlockSpec((1, 1, tile_b), lambda i: (i, 0, 0)),
        compiler_params=pltpu.CompilerParams(
            dimension_semantics=("parallel",),
            vmem_limit_bytes=32 * 1024 * 1024),
        cost_estimate=cost,
    )(obs, w1, b1, w2, b2, w3_row, b3_s)

    # Flatten (num_tiles, 1, tile_b) -> (num_tiles*tile_b,), drop the padded tail.
    return out.reshape(-1)[:B]


def init_params(key, obs_dim, hidden_sizes):
    """Weights stored as (in, out) = PyTorch W.T, biases as (1, out)."""
    sizes = [obs_dim] + list(hidden_sizes) + [1]
    names = ["1", "2", "3"]
    assert len(sizes) - 1 == len(names)
    params = {}
    for j, n in enumerate(names):
        fan_in, fan_out = sizes[j], sizes[j + 1]
        key, kw, kb = jax.random.split(key, 3)
        bound = 1.0 / jnp.sqrt(float(fan_in))  # PyTorch Linear default init range
        params[f"w{n}"] = jax.random.uniform(
            kw, (fan_in, fan_out), jnp.float32, -bound, bound)
        params[f"b{n}"] = jax.random.uniform(
            kb, (1, fan_out), jnp.float32, -bound, bound)
    return params


def reference_forward(obs, params):
    """Plain-JAX reference of the same MLP (Tanh activation, Identity output)."""
    h = jnp.tanh(obs @ params["w1"] + params["b1"])
    h = jnp.tanh(h @ params["w2"] + params["b2"])
    v = h @ params["w3"] + params["b3"]
    return jnp.squeeze(v, -1)


if __name__ == "__main__":
    key = jax.random.PRNGKey(0)
    obs_dim = 16
    hidden_sizes = (32, 32)

    k_obs, k_obs2, k_params = jax.random.split(key, 3)
    params = init_params(k_params, obs_dim, hidden_sizes)

    # Small single-tile case (batch=8).
    obs_small = jax.random.normal(k_obs, (8, obs_dim), jnp.float32)
    v_small = jax.block_until_ready(mlp_critic_forward(obs_small, params))
    v_small_ref = reference_forward(obs_small, params)
    assert v_small.shape == (8,)
    assert jnp.allclose(v_small, v_small_ref, atol=1e-4, rtol=1e-4)

    # Ragged multi-tile case (batch=200, auto tile -> 2 grid steps; the last
    # tile reads past the array edge and the tail rows are discarded).
    obs_big = jax.random.normal(k_obs2, (200, obs_dim), jnp.float32)
    v_big = jax.block_until_ready(mlp_critic_forward(obs_big, params))
    v_big_ref = reference_forward(obs_big, params)
    assert v_big.shape == (200,)
    assert jnp.allclose(v_big, v_big_ref, atol=1e-4, rtol=1e-4)

    # Explicit small tile override (4 grid steps, ragged last tile).
    v_big_t = jax.block_until_ready(mlp_critic_forward(obs_big, params, tile_b=64))
    assert jnp.allclose(v_big_t, v_big_ref, atol=1e-4, rtol=1e-4)

    # bf16 weights / bf16 MXU operands (obs stays f32 in HBM, cast in-kernel);
    # accumulation + tanh stay f32.  Looser tolerance for bf16 inputs.
    v_bf16 = jax.block_until_ready(
        mlp_critic_forward(obs_big, params, use_bf16=True))
    assert jnp.allclose(v_bf16, v_big_ref, atol=5e-2, rtol=5e-2)

    print("KERNEL_OK")
</pallas_src>

<mosaic_0001>
module attributes {stable_mosaic.version = 11 : i64} {
  func.func @_mlp_critic_kernel(%arg0: i32, %arg1: memref<8x16xf32, #tpu.memory_space<vmem>>, %arg2: memref<16x32xf32, #tpu.memory_space<vmem>>, %arg3: memref<1x32xf32, #tpu.memory_space<vmem>>, %arg4: memref<32x32xf32, #tpu.memory_space<vmem>>, %arg5: memref<1x32xf32, #tpu.memory_space<vmem>>, %arg6: memref<1x32xf32, #tpu.memory_space<vmem>>, %arg7: memref<1x1xf32, #tpu.memory_space<smem>>, %arg8: memref<1x1x8xf32, #tpu.memory_space<vmem>>) attributes {dimension_semantics = [#tpu.dimension_semantics<parallel>], iteration_bounds = array<i64: 1>, scalar_prefetch = 0 : i64, scratch_operands = 0 : i64, tpu.core_type = #tpu.core_type<tc>, window_params = [{transform_indices = @transform_0, window_bounds = array<i64: 8, 16>}, {pipeline_mode = #tpu.pipeline_mode<synchronous>, transform_indices = @transform_1, window_bounds = array<i64: 16, 32>}, {pipeline_mode = #tpu.pipeline_mode<synchronous>, transform_indices = @transform_2, window_bounds = array<i64: 1, 32>}, {pipeline_mode = #tpu.pipeline_mode<synchronous>, transform_indices = @transform_3, window_bounds = array<i64: 32, 32>}, {pipeline_mode = #tpu.pipeline_mode<synchronous>, transform_indices = @transform_4, window_bounds = array<i64: 1, 32>}, {pipeline_mode = #tpu.pipeline_mode<synchronous>, transform_indices = @transform_5, window_bounds = array<i64: 1, 32>}, {transform_indices = @transform_6, window_bounds = array<i64: 1, 1>}, {transform_indices = @transform_7, window_bounds = array<i64: 1, 1, 8>}]} {
    %c0 = arith.constant 0 : index
    %c0_0 = arith.constant 0 : index
    %0 = vector.load %arg1[%c0, %c0_0] : memref<8x16xf32, #tpu.memory_space<vmem>>, vector<8x16xf32>
    %c0_1 = arith.constant 0 : index
    %c0_2 = arith.constant 0 : index
    %1 = vector.load %arg2[%c0_1, %c0_2] : memref<16x32xf32, #tpu.memory_space<vmem>>, vector<16x32xf32>
    %cst = arith.constant dense<0.000000e+00> : vector<8x32xf32>
    %2 = tpu.matmul %0, %1, %cst {dimension_numbers = #tpu.dot_dimension_numbers<[1], [0], [0], [1], [0, 0, 1, 1], [], []>} : vector<8x16xf32>, vector<16x32xf32>, vector<8x32xf32> -> vector<8x32xf32>
    %c0_3 = arith.constant 0 : index
    %c0_4 = arith.constant 0 : index
    %3 = vector.load %arg3[%c0_3, %c0_4] : memref<1x32xf32, #tpu.memory_space<vmem>>, vector<1x32xf32>
    %4 = vector.broadcast %3 : vector<1x32xf32> to vector<8x32xf32>
    %5 = arith.addf %2, %4 : vector<8x32xf32>
    %6 = math.tanh %5 : vector<8x32xf32>
    %c0_5 = arith.constant 0 : index
    %c0_6 = arith.constant 0 : index
    %7 = vector.load %arg4[%c0_5, %c0_6] : memref<32x32xf32, #tpu.memory_space<vmem>>, vector<32x32xf32>
    %cst_7 = arith.constant dense<0.000000e+00> : vector<8x32xf32>
    %8 = tpu.matmul %6, %7, %cst_7 {dimension_numbers = #tpu.dot_dimension_numbers<[1], [0], [0], [1], [0, 0, 1, 1], [], []>} : vector<8x32xf32>, vector<32x32xf32>, vector<8x32xf32> -> vector<8x32xf32>
    %c0_8 = arith.constant 0 : index
    %c0_9 = arith.constant 0 : index
    %9 = vector.load %arg5[%c0_8, %c0_9] : memref<1x32xf32, #tpu.memory_space<vmem>>, vector<1x32xf32>
    %10 = vector.broadcast %9 : vector<1x32xf32> to vector<8x32xf32>
    %11 = arith.addf %8, %10 : vector<8x32xf32>
    %12 = math.tanh %11 : vector<8x32xf32>
    %c0_10 = arith.constant 0 : index
    %c0_11 = arith.constant 0 : index
    %13 = vector.load %arg6[%c0_10, %c0_11] : memref<1x32xf32, #tpu.memory_space<vmem>>, vector<1x32xf32>
    %cst_12 = arith.constant dense<0.000000e+00> : vector<1x8xf32>
    %14 = tpu.matmul %13, %12, %cst_12 {dimension_numbers = #tpu.dot_dimension_numbers<[1], [1], [0], [0], [0, 0, 1, 0], [], []>} : vector<1x32xf32>, vector<8x32xf32>, vector<1x8xf32> -> vector<1x8xf32>
    %c0_13 = arith.constant 0 : index
    %c0_14 = arith.constant 0 : index
    %15 = memref.load %arg7[%c0_13, %c0_14] : memref<1x1xf32, #tpu.memory_space<smem>>
    %16 = vector.broadcast %15 : f32 to vector<1x8xf32>
    %17 = arith.addf %14, %16 : vector<1x8xf32>
    %18 = vector.shape_cast %17 : vector<1x8xf32> to vector<1x1x8xf32>
    %c0_15 = arith.constant 0 : index
    %c0_16 = arith.constant 0 : index
    %c0_17 = arith.constant 0 : index
    %19 = vector.load %arg8[%c0_15, %c0_16, %c0_17] : memref<1x1x8xf32, #tpu.memory_space<vmem>>, vector<1x1x8xf32>
    tpu.vector_store %arg8[%c0_15, %c0_16, %c0_17], %18 {strides = array<i32>} : memref<1x1x8xf32, #tpu.memory_space<vmem>>, vector<1x1x8xf32>,
    return
  }
  func.func @transform_0(%arg0: i32) -> (i32, i32) {
    %c0_i32 = arith.constant 0 : i32
    %c0_i32_0 = arith.constant 0 : i32
    return %arg0, %c0_i32 : i32, i32
  }
  func.func @transform_1(%arg0: i32) -> (i32, i32) {
    %c0_i32 = arith.constant 0 : i32
    %c0_i32_0 = arith.constant 0 : i32
    %c0_i32_1 = arith.constant 0 : i32
    return %c0_i32, %c0_i32_0 : i32, i32
  }
  func.func @transform_2(%arg0: i32) -> (i32, i32) {
    %c0_i32 = arith.constant 0 : i32
    %c0_i32_0 = arith.constant 0 : i32
    %c0_i32_1 = arith.constant 0 : i32
    return %c0_i32, %c0_i32_0 : i32, i32
  }
  func.func @transform_3(%arg0: i32) -> (i32, i32) {
    %c0_i32 = arith.constant 0 : i32
    %c0_i32_0 = arith.constant 0 : i32
    %c0_i32_1 = arith.constant 0 : i32
    return %c0_i32, %c0_i32_0 : i32, i32
  }
  func.func @transform_4(%arg0: i32) -> (i32, i32) {
    %c0_i32 = arith.constant 0 : i32
    %c0_i32_0 = arith.constant 0 : i32
    %c0_i32_1 = arith.constant 0 : i32
    return %c0_i32, %c0_i32_0 : i32, i32
  }
  func.func @transform_5(%arg0: i32) -> (i32, i32) {
    %c0_i32 = arith.constant 0 : i32
    %c0_i32_0 = arith.constant 0 : i32
    %c0_i32_1 = arith.constant 0 : i32
    return %c0_i32, %c0_i32_0 : i32, i32
  }
  func.func @transform_6(%arg0: i32) -> (i32, i32) {
    %c0_i32 = arith.constant 0 : i32
    %c0_i32_0 = arith.constant 0 : i32
    %c0_i32_1 = arith.constant 0 : i32
    return %c0_i32, %c0_i32_0 : i32, i32
  }
  func.func @transform_7(%arg0: i32) -> (i32, i32, i32) {
    %c0_i32 = arith.constant 0 : i32
    %c0_i32_0 = arith.constant 0 : i32
    %c0_i32_1 = arith.constant 0 : i32
    return %arg0, %c0_i32, %c0_i32_0 : i32, i32, i32
  }
}

</mosaic_0001>

<bundles_post_ra>
// kernel: tpu_custom_call.1
= control target key start
LH: loop header
LB: loop body
LE: loop exit
PB: predicated region body
PF: predicated region fallthrough
CT: control target
= control target key end

     0   :  { %13 = vsyncpa [#allocation4], 0  ;;  %s605_s0 = inlined_call_operand.hbm [shape: f32[8,16], index: 0, kind: input, shape index: {}]   ;;  %s606_s1 = inlined_call_operand.hbm [shape: f32[16,32], index: 1, kind: input, shape index: {}]   ;;  %s607_s2 = inlined_call_operand.vmem [shape: f32[1,32], index: 2, kind: input, shape index: {}]   ;;  %s608_s3 = inlined_call_operand.hbm [shape: f32[32,32], index: 3, kind: input, shape index: {}]   ;;  %s609_s4 = inlined_call_operand.vmem [shape: f32[1,32], index: 4, kind: input, shape index: {}]   ;;  %s610_s5 = inlined_call_operand.vmem [shape: f32[1,32], index: 5, kind: input, shape index: {}]   ;;  %s611_s6 = inlined_call_operand.<no memory space> [shape: f32[1,1], index: 6, kind: input, shape index: {}]   ;;  %s612_s7 = inlined_call_operand.hbm [shape: f32[1,1,8], index: 7, kind: output, shape index: {}]  }
   0x1   :  { %14 = vsyncpa [#allocation7], 0 }
   0x2   :  { %15 = vsyncpa [#allocation5], 0  ;;  %s490_s24 = smov [#allocation6]   ;;  %s396_s28 = scalar_lea.hbm %s606_s1, 256 }
   0x3   :  { %s31_s25 = sshll.u32 %s490_s24, 4  ;;  %p397_p0 = scmp.ne.s32.totalorder %s606_s1, %s396_s28  ;;  %s32_s25 = int_to_ptr.vmem [resolvable:$true] %s31_s25 }
   0x4   :  { %p400_p1 = scmp.lt.u32.totalorder %s396_s28, %s606_s1 }
   0x6   :  { %p402_p2 = pnand %p400_p1, %p397_p0 }
   0x8   :  { %405 = shalt.err (!%p402_p2)
}
   0x9   :  { %s406_s10 = scalar_lea.vmem %s32_s25, 256  ;;  %p411_p4 = scmp.lt.s32.totalorder %s32_s25, %s32_s25 }
   0xa   :  { %p407_p3 = scmp.ne.s32.totalorder %s32_s25, %s406_s10  ;;  %p412_p5 = scmp.lt.s32.totalorder %s406_s10, %s406_s10 }
   0xc   :  { %p413_p6 = por %p412_p5, %p411_p4 }
   0xe   :  { %p414_p7 = pnand %p413_p6, %p407_p3 }
  0x10   :  { %417 = shalt.err (!%p414_p7)
}
  0x11   :  { %s491_s11 = smov 128   ;;  %s492_s12 = smov 8  }
  0x12   :  { %37 = dma.hbm_to_vmem [thread:$0]  %s606_s1, 256, %s32_s25, [#allocation7], %s491_s11, %s491_s11, %s492_s12  }
  0x13   :  { %s493_s15 = smov [#allocation3]   ;;  %s494_s17 = smov [#allocation8]  }
  0x14   :  { %s22_s16 = sshll.u32 %s493_s15, 4  ;;  %s45_s18 = sshll.u32 %s494_s17, 4  ;;  %s23_s16 = int_to_ptr.vmem [resolvable:$true] %s22_s16  ;;  %s46_s18 = int_to_ptr.vmem [resolvable:$true] %s45_s18 }
  0x15   :  { %s418_s21 = scalar_lea.hbm %s605_s0, 128 }
  0x16   :  { %p419_p8 = scmp.ne.s32.totalorder %s605_s0, %s418_s21  ;;  %p422_p9 = scmp.lt.u32.totalorder %s418_s21, %s605_s0 }
  0x18   :  { %p424_p10 = pnand %p422_p9, %p419_p8 }
  0x1a   :  { %427 = shalt.err (!%p424_p10)
}
  0x1b   :  { %s428_s1 = scalar_lea.vmem %s23_s16, 128  ;;  %p433_p12 = scmp.lt.s32.totalorder %s23_s16, %s23_s16 }
  0x1c   :  { %p429_p11 = scmp.ne.s32.totalorder %s23_s16, %s428_s1  ;;  %p434_p13 = scmp.lt.s32.totalorder %s428_s1, %s428_s1 }
  0x1e   :  { %p435_p0 = por %p434_p13, %p433_p12 }
  0x20   :  { %p436_p1 = pnand %p435_p0, %p429_p11 }
  0x22   :  { %439 = shalt.err (!%p436_p1)
}
  0x23   :  { %25 = dma.hbm_to_vmem [thread:$0]  %s605_s0, 128, %s23_s16, [#allocation4]  }
  0x24   :  { %s440_s30 = scalar_lea.hbm %s608_s3, 512 }
  0x25   :  { %p441_p2 = scmp.ne.s32.totalorder %s608_s3, %s440_s30  ;;  %p444_p3 = scmp.lt.u32.totalorder %s440_s30, %s608_s3 }
  0x27   :  { %p446_p4 = pnand %p444_p3, %p441_p2 }
  0x29   :  { %449 = shalt.err (!%p446_p4)
}
  0x2a   :  { %s450_s14 = scalar_lea.vmem %s46_s18, 512  ;;  %p455_p6 = scmp.lt.s32.totalorder %s46_s18, %s46_s18 }
  0x2b   :  { %p451_p5 = scmp.ne.s32.totalorder %s46_s18, %s450_s14  ;;  %p456_p7 = scmp.lt.s32.totalorder %s450_s14, %s450_s14 }
  0x2d   :  { %p457_p8 = por %p456_p7, %p455_p6 }
  0x2f   :  { %p458_p9 = pnand %p457_p8, %p451_p5 }
  0x31   :  { %461 = shalt.err (!%p458_p9)
}
  0x32   :  { %51 = dma.hbm_to_vmem [thread:$0]  %s608_s3, 512, %s46_s18, [#allocation7], %s491_s11, %s491_s11, %s492_s12  }
  0x33   :  { %484 = dma.done.wait [#allocation4], 128  }
  0x34   :  { %485 = vsyncadd [#allocation4], 4294967168 }
  0x35   :  { %486 = dma.done.wait [#allocation7], 768  }
  0x36   :  { %487 = vsyncadd [#allocation7], 4294966528  ;;  %v495_v0 = vmov 0.0|0.0   ;;  %vm496_vm0 = vmmov 0   ;;  %v497_v1 = vmov 0.0   ;;  %v68_v2 = vld [vmem:[#allocation6] sm:$0xff]  ;;  %v240_v23 = vstv %s611_s6 }
  0x37   :  { %374 = vmatprep.subr.bf16.mxu0 %v495_v0  ;;  %355 = vmatprep.mubr.msk.f32.mxu0 %vm496_vm0, %v497_v1  ;;  %v69_v3 = vld [vmem:[#allocation6 + $0x8] sm:$0xff]  ;;  %v67_v5 = vld [vmem:[#allocation3] sm:$0xff]  ;;  %vm77_vm1 = vcmask 130048   ;;  %v152_v6 = vld [vmem:[#allocation8] sm:$0xff]  ;;  %vm163_vm2 = vcmask 261120   ;;  %s498_s20 = smov [#allocation9]  }
  0x38   :  { %377 = vmatprep.subr.bf16.mxu1 %v495_v0  ;;  %366 = vmatprep.mubr.msk.f32.mxu1 %vm496_vm0, %v497_v1  ;;  %v375_v4 = vpack.c.bf16 %v69_v3, %v68_v2  ;;  %v153_v7 = vld [vmem:[#allocation8 + $0x8] sm:$0xff]  ;;  %v154_v8 = vld [vmem:[#allocation8 + $0x10] sm:$0xff]  ;;  %v155_v10 = vld [vmem:[#allocation8 + $0x18] sm:$0xff]  ;;  %s325_s21 = sshll.u32 %s498_s20, 4  ;;  %vm317_vm3 = vcmask 57344   ;;  %s326_s21 = int_to_ptr.vmem [resolvable:$true] %s325_s21 }
  0x39   :  { %v378_v9 = vpack.c.bf16 %v153_v7, %v152_v6  ;;  %v381_v11 = vpack.c.bf16 %v155_v10, %v154_v8  ;;  %v335_v12 = vld [vmem:[%s607_s2] ss:$0 sm:$0xff]  ;;  %s466_s22 = scalar_lea.vmem %s326_s21, 32  ;;  %p467_p11 = scmp.lt.s32.totalorder %s326_s21, %s326_s21 }
  0x3a   :  { %376 = vmatpush3.bf16.msra.mxu0 %v375_v4  ;;  %v337_v17 = vld [vmem:[%s609_s4] ss:$0 sm:$0xff]  ;;  %s462_s4 = scalar_lea.vmem %s326_s21, 16 }
  0x3b   :  { %369 = vmatprep.subr.mxu0 %v497_v1  ;;  %379 = vmatpush3.bf16.msra.mxu1 %v378_v9  ;;  %v238_v22 = vld [vmem:[%s610_s5] sm:$0x1]  ;;  %p463_p10 = scmp.ne.s32.totalorder %s326_s21, %s462_s4  ;;  %p468_p12 = scmp.lt.s32.totalorder %s466_s22, %s462_s4 }
  0x3c   :  { %380 = vmatprep.subr.bf16.mxu1 %v495_v0 }
  0x3d   :  { %356 = vmatmul.mubr.msk.f32.vlgmr.msra.gmra.mrb[0].mxu0 %vm77_vm1, %v67_v5  ;;  %p469_p13 = por %p468_p12, %p467_p11 }
  0x3e   :  { %371 = vmatprep.mubr.msk.f32.mxu0 %vm496_vm0, %v497_v1 }
  0x3f   :  { %382 = vmatpush3.bf16.msra.mxu1 %v381_v11  ;;  %p470_p0 = pnand %p469_p13, %p463_p10 }
 0x110   :  { %v147_v13 = vpop.f32.mrb[0].mxu0 }
 0x111   :  { %v148_v14 = vadd.f32 %v335_v12, %v147_v13  ;;  %v357_v15 = vpop.f32.mrb[1].mxu0 }
 0x113   :  { %392 = vtanh.f32 %v148_v14 }
 0x11d   :  { %v393_v16 = vpop.eup %392 }
 0x11e   :  { %367 = vmatmul.mubr.msk.f32.vlgmr.msra.gmra.mrb[0].mxu1 %vm163_vm2, %v393_v16 }
 0x1f1   :  { %v233_v18 = vpop.f32.mrb[0].mxu1 }
 0x1f2   :  { %v234_v19 = vadd.f32 %v337_v17, %v233_v18  ;;  %v368_v20 = vpop.f32.mrb[1].mxu1 }
 0x1f4   :  { %394 = vtanh.f32 %v234_v19 }
 0x1fe   :  { %v395_v21 = vpop.eup %394 }
 0x1ff   :  { %370 = vmatpush3.xpose.msk.msra.mxu0 %vm163_vm2, %v395_v21 }
 0x202   :  { %372 = vmatmul.mubr.msk.f32.vlgmr.msra.gmra.mrb[2].mxu0 %vm163_vm2, %v238_v22 }
 0x2d5   :  { %v313_v24 = vpop.f32.mrb[2].mxu0 }
 0x2d6   :  { %v314_v25 = vadd.f32 %v313_v24, %v240_v23  ;;  %v373_v26 = vpop.f32.mrb[3].mxu0 }
 0x2d8   :  { %318 = vst.msk [vmem:[#allocation9] sm:$0x1] %vm317_vm3, %v314_v25 }
 0x2d9   :  { %473 = shalt.err (!%p470_p0)
}
 0x2da   :  { %s474_s6 = scalar_lea.hbm %s612_s7, 16 }
 0x2db   :  { %p475_p1 = scmp.ne.s32.totalorder %s612_s7, %s474_s6  ;;  %p478_p2 = scmp.lt.u32.totalorder %s474_s6, %s612_s7 }
 0x2dd   :  { %p480_p3 = pnand %p478_p2, %p475_p1 }
 0x2df   :  { %483 = shalt.err (!%p480_p3)
}
 0x2e0   :  { %328 = dma.vmem_to_hbm [thread:$0]  %s326_s21, 16, %s612_s7, [#allocation5]  }
 0x2e1   :  { %488 = dma.done.wait [#allocation5], 16  }
 0x2e2   :  { %489 = vsyncadd [#allocation5], 4294967280 }
 0x2e3   :  { %332 = vsyncpa [#allocation4], 1 }
 0x2e4   :  { %333 = vsyncpa [#allocation7], 1 }
 0x2e5   :  { %334 = vsyncpa [#allocation5], 1 }

</bundles_post_ra>
